<compile_context>
chip_gen: v6e
topology: v6e:2x2x1
jax: 0.10.0
libtpu: 0.0.40
codegen_flags: <defaults>
</compile_context>

<pallas_src>
import jax
import jax.numpy as jnp
from jax import lax
from jax.experimental import pallas as pl
from jax.experimental.pallas import tpu as pltpu

_MATMUL_DTYPE = jnp.bfloat16


def _round_up(v, m):
    return ((v + m - 1) // m) * m


def _vmem_capacity_bytes():
    try:
        return int(pltpu.get_tpu_info().vmem_capacity_bytes)
    except Exception:
        return 64 * 2**20  # conservative fallback (v7x-sized VMEM)


def _bspec(shape, index_map, *, single=False):
    """BlockSpec; single-buffer operands whose block index never changes."""
    if single:
        try:
            return pl.BlockSpec(shape, index_map, pipeline_mode=pl.Buffered(1))
        except TypeError:  # older jax without pipeline_mode
            pass
    return pl.BlockSpec(shape, index_map)


def _plan(n, d_in, h_dim, d_out, vmem_limit, tile_n):
    """Choose row tile (tn), H chunk (th) and padded extents within the VMEM budget."""
    dop = _round_up(d_out, 128)
    hp0 = _round_up(h_dim, 128)
    np8 = _round_up(n, 8)
    tn = min(tile_n, np8)
    budget = int(vmem_limit * 0.8)

    def step_bytes(tn_, th_):
        # worst-case per-grid-step VMEM across the two passes (2x = double-buffered streams)
        p1 = (2 * tn_ * d_in * 4          # x tile (f32)
              + 2 * d_in * th_ * 2        # w1 slice (bf16)
              + 2 * tn_ * th_ * 2         # h tile out (bf16)
              + 4 * th_ * 4)              # sum/ssq accumulators
        p2 = (2 * tn_ * th_ * 2           # h tile in (bf16)
              + 4 * th_ * 4               # scale/shift
              + 2 * th_ * dop * 2         # w2 slice (bf16)
              + dop * 4                   # b2
              + 2 * tn_ * dop * 4)        # output tile (f32, revisited)
        return max(p1, p2)

    candidates = [hp0] + [c for c in (4096, 2048, 1024, 512, 256, 128) if c < hp0]
    fitting = [c for c in candidates if step_bytes(tn, c) <= budget] or [candidates[-1]]
    # minimize padded H, then prefer the largest chunk
    th = min(fitting, key=lambda c: (_round_up(h_dim, c), -c))
    while tn > 8 and step_bytes(tn, th) > budget:
        tn = _round_up(tn // 2, 8)

    # Balance row tiles so batch padding waste is < 8 rows (not up to tn-1 rows).
    grid_n = pl.cdiv(np8, tn)
    tn = _round_up(pl.cdiv(np8, grid_n), 8)
    n_pad = grid_n * tn

    hp = _round_up(h_dim, th)
    grid_h = hp // th
    return tn, n_pad, grid_n, th, hp, grid_h, dop


# ------------------- pass 1: h = x @ w1 (bf16 out) + batch statistics -------------------
def _stats_kernel(x_ref, w1_ref, h_ref, sum_ref, ssq_ref):
    # grid = (H-chunks [parallel], row tiles [arbitrary / reduction])
    @pl.when(pl.program_id(1) == 0)
    def _():
        sum_ref[...] = jnp.zeros_like(sum_ref)
        ssq_ref[...] = jnp.zeros_like(ssq_ref)

    # (tn, D)bf16 @ (D, th)bf16 -> f32 on the MXU.  b1 is omitted: it is exactly
    # cancelled by BatchNorm's batch-mean subtraction (zero-padded batch rows thus
    # contribute exact zeros to the statistics).
    h = jnp.dot(x_ref[...].astype(w1_ref.dtype), w1_ref[...],
                preferred_element_type=jnp.float32)
    sum_ref[...] += jnp.sum(h, axis=0, keepdims=True)
    ssq_ref[...] += jnp.sum(h * h, axis=0, keepdims=True)
    h_ref[...] = h.astype(h_ref.dtype)


# ---------------- pass 2: BN-as-FMA, ReLU, second Linear (K = H chunked) ----------------
def _apply_kernel(h_ref, scale_ref, shift_ref, w2_ref, b2_ref, o_ref):
    # grid = (row tiles [parallel], H-chunks [arbitrary / reduction])
    k = pl.program_id(1)
    # BatchNorm folded into one per-feature FMA, then ReLU (f32 VPU math, v5e-safe).
    y = jnp.maximum(h_ref[...].astype(jnp.float32) * scale_ref[...] + shift_ref[...], 0.0)
    # Dropout: eval-mode identity (see TODO at top of file).
    part = jnp.dot(y.astype(w2_ref.dtype), w2_ref[...],
                   preferred_element_type=jnp.float32)

    @pl.when(k == 0)
    def _():
        o_ref[...] = part + b2_ref[...]

    @pl.when(k > 0)
    def _():
        o_ref[...] += part


def mlp_forward(x, w1, b1, gamma, beta, w2, b2, *, eps=1e-6, tile_n=None):
    """x: (N, D_in) f32.  w1: (D_in, H), b1: (1, H), gamma/beta: (1, H),
    w2: (H, D_out), b2: (1, D_out).  Returns (N, D_out) f32.

    b1 is accepted for API fidelity but unused (cancelled by batch-mean subtraction).
    """
    del b1
    n, d_in = x.shape
    h_dim = w1.shape[1]
    d_out = w2.shape[1]

    vmem_cap = _vmem_capacity_bytes()
    vmem_limit = int(min(0.75 * vmem_cap, 112 * 2**20))   # ~96 MiB v5e/v6e, ~48 MiB v7x
    if tile_n is None:
        tile_n = 1024 if vmem_cap >= 100 * 2**20 else 512

    tn, n_pad, grid_n, th, hp, grid_h, dop = _plan(
        n, d_in, h_dim, d_out, vmem_limit, tile_n)
    single = grid_h == 1   # constant block index -> single-buffer

    mm = _MATMUL_DTYPE
    # One-time weight pad/cast (lane-dense H / D_out).  x is NOT copied/padded in HBM
    # except for row padding when the batch does not divide into row tiles.
    w1p = jnp.zeros((d_in, hp), mm).at[:, :h_dim].set(w1.astype(mm))
    w2p = jnp.zeros((hp, dop), mm).at[:h_dim, :d_out].set(w2.astype(mm))
    gp = jnp.zeros((1, hp), jnp.float32).at[:, :h_dim].set(gamma.astype(jnp.float32))
    bp = jnp.zeros((1, hp), jnp.float32).at[:, :h_dim].set(beta.astype(jnp.float32))
    b2p = jnp.zeros((1, dop), jnp.float32).at[:, :d_out].set(b2.astype(jnp.float32))
    xp = x if n_pad == n else jnp.zeros((n_pad, d_in), x.dtype).at[:n].set(x)

    # ---- pass 1: h (bf16) + per-feature sum(h), sum(h^2) across row tiles ----
    p1_cost = pl.CostEstimate(
        flops=2 * n_pad * d_in * hp + 3 * n_pad * hp,
        transcendentals=0,
        bytes_accessed=int(n_pad * d_in * 4 * grid_h + d_in * hp * 2
                           + n_pad * hp * 2 + 2 * hp * 4))
    h_bf16, sum_h, ssq_h = pl.pallas_call(
        _stats_kernel,
        out_shape=(jax.ShapeDtypeStruct((n_pad, hp), mm),
                   jax.ShapeDtypeStruct((1, hp), jnp.float32),
                   jax.ShapeDtypeStruct((1, hp), jnp.float32)),
        grid=(grid_h, grid_n),
        in_specs=[
            pl.BlockSpec((tn, d_in), lambda j, i: (i, 0)),          # x (f32, full-extent cols)
            _bspec((d_in, th), lambda j, i: (0, j), single=single), # w1 slice
        ],
        out_specs=(
            pl.BlockSpec((tn, th), lambda j, i: (i, j)),            # h
            pl.BlockSpec((1, th), lambda j, i: (0, j)),             # sum  (resident over i)
            pl.BlockSpec((1, th), lambda j, i: (0, j)),             # ssq  (resident over i)
        ),
        compiler_params=pltpu.CompilerParams(
            dimension_semantics=("parallel", "arbitrary"),
            vmem_limit_bytes=vmem_limit),
        cost_estimate=p1_cost,
    )(xp, w1p)

    # ---- tiny XLA epilogue: fold BN into one per-feature FMA ----
    inv_n = 1.0 / n
    mean = sum_h * inv_n
    var = jnp.maximum(ssq_h * inv_n - mean * mean, 0.0)   # biased batch variance
    scale = lax.rsqrt(var + eps) * gp
    shift = bp - mean * scale

    # ---- pass 2: BN FMA + ReLU + second matmul, K (= H) chunked on inner axis ----
    p2_cost = pl.CostEstimate(
        flops=2 * n_pad * hp * dop + 4 * n_pad * hp,
        transcendentals=0,
        bytes_accessed=int(n_pad * hp * 2 + hp * dop * 2 + 2 * hp * 4 + dop * 4
                           + n_pad * dop * 4))
    out_padded = pl.pallas_call(
        _apply_kernel,
        out_shape=jax.ShapeDtypeStruct((n_pad, dop), jnp.float32),
        grid=(grid_n, grid_h),
        in_specs=[
            pl.BlockSpec((tn, th), lambda i, k: (i, k)),            # h
            _bspec((1, th), lambda i, k: (0, k), single=single),    # scale
            _bspec((1, th), lambda i, k: (0, k), single=single),    # shift
            _bspec((th, dop), lambda i, k: (k, 0), single=single),  # w2 slice
            _bspec((1, dop), lambda i, k: (0, 0), single=True),     # b2 (always resident)
        ],
        out_specs=pl.BlockSpec((tn, dop), lambda i, k: (i, 0)),     # resident over k
        compiler_params=pltpu.CompilerParams(
            dimension_semantics=("parallel", "arbitrary"),
            vmem_limit_bytes=vmem_limit),
        cost_estimate=p2_cost,
    )(h_bf16, scale, shift, w2p, b2p)

    return out_padded[:n, :d_out]


def _init_params(key, dim_input, dim_hidden, dim_output):
    k1, k2, k3, k4 = jax.random.split(key, 4)
    # PyTorch-style uniform init (U[-1/sqrt(fan_in), 1/sqrt(fan_in)]).
    lim1 = 1.0 / (dim_input ** 0.5)
    lim2 = 1.0 / (dim_hidden ** 0.5)
    w1 = jax.random.uniform(k1, (dim_input, dim_hidden), jnp.float32, -lim1, lim1)
    b1 = jax.random.uniform(k2, (1, dim_hidden), jnp.float32, -lim1, lim1)
    w2 = jax.random.uniform(k3, (dim_hidden, dim_output), jnp.float32, -lim2, lim2)
    b2 = jax.random.uniform(k4, (1, dim_output), jnp.float32, -lim2, lim2)
    gamma = jnp.ones((1, dim_hidden), jnp.float32)   # BatchNorm1d weight init
    beta = jnp.zeros((1, dim_hidden), jnp.float32)   # BatchNorm1d bias init
    return w1, b1, gamma, beta, w2, b2


def _reference(x, w1, b1, gamma, beta, w2, b2, eps=1e-6):
    """PyTorch-structured reference (includes b1, which cancels under BN) using the
    same mixed precision as the kernel: bf16 matmul operands, f32 accumulation."""
    mm = _MATMUL_DTYPE
    dot = lambda a, b: jnp.dot(a.astype(mm), b.astype(mm),
                               preferred_element_type=jnp.float32)
    h = dot(x, w1) + b1
    mean = h.mean(axis=0, keepdims=True)
    var = ((h - mean) ** 2).mean(axis=0, keepdims=True)
    y = (h - mean) * lax.rsqrt(var + eps) * gamma + beta
    y = jnp.maximum(y, 0.0)
    return dot(y, w2) + b2


if __name__ == "__main__":
    dim_input, dim_hidden, dim_output = 32, 64, 16
    batch = 8

    key = jax.random.PRNGKey(0)
    kx, kp = jax.random.split(key)
    x = jax.random.normal(kx, (batch, dim_input), jnp.float32)
    params = _init_params(kp, dim_input, dim_hidden, dim_output)

    out = mlp_forward(x, *params)
    jax.block_until_ready(out)

    ref = _reference(x, *params)
    assert out.shape == (batch, dim_output)
    err = float(jnp.max(jnp.abs(out - ref)))
    assert jnp.allclose(out, ref, atol=2e-2, rtol=2e-2), f"max abs diff {err}"

    print("KERNEL_OK")
</pallas_src>

<mosaic_0001>
module attributes {stable_mosaic.version = 11 : i64} {
  func.func @_stats_kernel(%arg0: i32, %arg1: i32, %arg2: memref<8x32xf32, #tpu.memory_space<vmem>>, %arg3: memref<32x128xbf16, #tpu.memory_space<vmem>>, %arg4: memref<8x128xbf16, #tpu.memory_space<vmem>>, %arg5: memref<1x128xf32, #tpu.memory_space<vmem>>, %arg6: memref<1x128xf32, #tpu.memory_space<vmem>>) attributes {dimension_semantics = [#tpu.dimension_semantics<parallel>, #tpu.dimension_semantics<arbitrary>], iteration_bounds = array<i64: 1, 1>, scalar_prefetch = 0 : i64, scratch_operands = 0 : i64, tpu.core_type = #tpu.core_type<tc>, window_params = [{transform_indices = @transform_0, window_bounds = array<i64: 8, 32>}, {pipeline_mode = #tpu.pipeline_mode<synchronous>, transform_indices = @transform_1, window_bounds = array<i64: 32, 128>}, {transform_indices = @transform_2, window_bounds = array<i64: 8, 128>}, {transform_indices = @transform_3, window_bounds = array<i64: 1, 128>}, {transform_indices = @transform_4, window_bounds = array<i64: 1, 128>}]} {
    %c0_i32 = arith.constant 0 : i32
    %0 = arith.cmpi eq, %arg1, %c0_i32 : i32
    %1 = arith.extui %0 : i1 to i32
    %c0_i32_0 = arith.constant 0 : i32
    %2 = arith.cmpi ne, %1, %c0_i32_0 : i32
    scf.if %2 {
      %cst_16 = arith.constant 0.000000e+00 : f32
      %20 = vector.broadcast %cst_16 : f32 to vector<1x128xf32>
      %c0_17 = arith.constant 0 : index
      %c0_18 = arith.constant 0 : index
      %21 = vector.load %arg5[%c0_17, %c0_18] : memref<1x128xf32, #tpu.memory_space<vmem>>, vector<1x128xf32>
      tpu.vector_store %arg5[%c0_17, %c0_18], %20 {strides = array<i32>} : memref<1x128xf32, #tpu.memory_space<vmem>>, vector<1x128xf32>,
      %cst_19 = arith.constant 0.000000e+00 : f32
      %22 = vector.broadcast %cst_19 : f32 to vector<1x128xf32>
      %c0_20 = arith.constant 0 : index
      %c0_21 = arith.constant 0 : index
      %23 = vector.load %arg6[%c0_20, %c0_21] : memref<1x128xf32, #tpu.memory_space<vmem>>, vector<1x128xf32>
      tpu.vector_store %arg6[%c0_20, %c0_21], %22 {strides = array<i32>} : memref<1x128xf32, #tpu.memory_space<vmem>>, vector<1x128xf32>,
    } else {
    }
    %c0 = arith.constant 0 : index
    %c0_1 = arith.constant 0 : index
    %3 = vector.load %arg2[%c0, %c0_1] : memref<8x32xf32, #tpu.memory_space<vmem>>, vector<8x32xf32>
    %4 = arith.truncf %3 : vector<8x32xf32> to vector<8x32xbf16>
    %c0_2 = arith.constant 0 : index
    %c0_3 = arith.constant 0 : index
    %5 = vector.load %arg3[%c0_2, %c0_3] : memref<32x128xbf16, #tpu.memory_space<vmem>>, vector<32x128xbf16>
    %cst = arith.constant dense<0.000000e+00> : vector<8x128xf32>
    %6 = tpu.matmul %4, %5, %cst {dimension_numbers = #tpu.dot_dimension_numbers<[1], [0], [0], [1], [0, 0, 1, 1], [], []>} : vector<8x32xbf16>, vector<32x128xbf16>, vector<8x128xf32> -> vector<8x128xf32>
    %c0_4 = arith.constant 0 : index
    %c0_5 = arith.constant 0 : index
    %7 = vector.load %arg5[%c0_4, %c0_5] : memref<1x128xf32, #tpu.memory_space<vmem>>, vector<1x128xf32>
    %cst_6 = arith.constant dense<0.000000e+00> : vector<128xf32>
    %8 = vector.multi_reduction <add>, %6, %cst_6 [0] : vector<8x128xf32> to vector<128xf32>
    %9 = vector.shape_cast %8 : vector<128xf32> to vector<1x128xf32>
    %10 = arith.addf %7, %9 : vector<1x128xf32>
    %c0_7 = arith.constant 0 : index
    %c0_8 = arith.constant 0 : index
    %11 = vector.load %arg5[%c0_7, %c0_8] : memref<1x128xf32, #tpu.memory_space<vmem>>, vector<1x128xf32>
    tpu.vector_store %arg5[%c0_7, %c0_8], %10 {strides = array<i32>} : memref<1x128xf32, #tpu.memory_space<vmem>>, vector<1x128xf32>,
    %c0_9 = arith.constant 0 : index
    %c0_10 = arith.constant 0 : index
    %12 = vector.load %arg6[%c0_9, %c0_10] : memref<1x128xf32, #tpu.memory_space<vmem>>, vector<1x128xf32>
    %13 = arith.mulf %6, %6 : vector<8x128xf32>
    %cst_11 = arith.constant dense<0.000000e+00> : vector<128xf32>
    %14 = vector.multi_reduction <add>, %13, %cst_11 [0] : vector<8x128xf32> to vector<128xf32>
    %15 = vector.shape_cast %14 : vector<128xf32> to vector<1x128xf32>
    %16 = arith.addf %12, %15 : vector<1x128xf32>
    %c0_12 = arith.constant 0 : index
    %c0_13 = arith.constant 0 : index
    %17 = vector.load %arg6[%c0_12, %c0_13] : memref<1x128xf32, #tpu.memory_space<vmem>>, vector<1x128xf32>
    tpu.vector_store %arg6[%c0_12, %c0_13], %16 {strides = array<i32>} : memref<1x128xf32, #tpu.memory_space<vmem>>, vector<1x128xf32>,
    %18 = arith.truncf %6 : vector<8x128xf32> to vector<8x128xbf16>
    %c0_14 = arith.constant 0 : index
    %c0_15 = arith.constant 0 : index
    %19 = vector.load %arg4[%c0_14, %c0_15] : memref<8x128xbf16, #tpu.memory_space<vmem>>, vector<8x128xbf16>
    tpu.vector_store %arg4[%c0_14, %c0_15], %18 {strides = array<i32>} : memref<8x128xbf16, #tpu.memory_space<vmem>>, vector<8x128xbf16>,
    return
  }
  func.func @transform_0(%arg0: i32, %arg1: i32) -> (i32, i32) {
    %c0_i32 = arith.constant 0 : i32
    %c0_i32_0 = arith.constant 0 : i32
    return %arg1, %c0_i32 : i32, i32
  }
  func.func @transform_1(%arg0: i32, %arg1: i32) -> (i32, i32) {
    %c0_i32 = arith.constant 0 : i32
    %c0_i32_0 = arith.constant 0 : i32
    return %c0_i32, %arg0 : i32, i32
  }
  func.func @transform_2(%arg0: i32, %arg1: i32) -> (i32, i32) {
    %c0_i32 = arith.constant 0 : i32
    return %arg1, %arg0 : i32, i32
  }
  func.func @transform_3(%arg0: i32, %arg1: i32) -> (i32, i32) {
    %c0_i32 = arith.constant 0 : i32
    %c0_i32_0 = arith.constant 0 : i32
    return %c0_i32, %arg0 : i32, i32
  }
  func.func @transform_4(%arg0: i32, %arg1: i32) -> (i32, i32) {
    %c0_i32 = arith.constant 0 : i32
    %c0_i32_0 = arith.constant 0 : i32
    return %c0_i32, %arg0 : i32, i32
  }
}

</mosaic_0001>

<bundles_post_ra>
// kernel: tpu_custom_call.1
= control target key start
LH: loop header
LB: loop body
LE: loop exit
PB: predicated region body
PF: predicated region fallthrough
CT: control target
= control target key end

     0   :  { %10 = vsyncpa [#allocation3], 0  ;;  %s357_s0 = inlined_call_operand.hbm [shape: f32[8,32], index: 0, kind: input, shape index: {}]   ;;  %s358_s1 = inlined_call_operand.hbm [shape: bf16[32,128], index: 1, kind: input, shape index: {}]   ;;  %s359_s2 = inlined_call_operand.hbm [shape: bf16[8,128], index: 2, kind: output, shape index: {0}]   ;;  %s360_s3 = inlined_call_operand.hbm [shape: f32[1,128], index: 3, kind: output, shape index: {1}]   ;;  %s361_s4 = inlined_call_operand.hbm [shape: f32[1,128], index: 4, kind: output, shape index: {2}]  }
   0x1   :  { %11 = vsyncpa [#allocation6], 0 }
   0x2   :  { %12 = vsyncpa [#allocation4], 0 }
   0x3   :  { %13 = vsyncpa [#allocation9], 0  ;;  %s308_s15 = smov [#allocation2]   ;;  %s309_s17 = smov [#allocation5]  }
   0x4   :  { %s20_s16 = sshll.u32 %s308_s15, 4  ;;  %s29_s18 = sshll.u32 %s309_s17, 4  ;;  %s21_s16 = int_to_ptr.vmem [resolvable:$true] %s20_s16  ;;  %s30_s18 = int_to_ptr.vmem [resolvable:$true] %s29_s18 }
   0x5   :  { %s208_s19 = scalar_lea.vmem %s21_s16, 128  ;;  %p213_p1 = scmp.lt.s32.totalorder %s21_s16, %s21_s16 }
   0x6   :  { %p209_p0 = scmp.ne.s32.totalorder %s21_s16, %s208_s19  ;;  %p214_p2 = scmp.lt.s32.totalorder %s208_s19, %s208_s19 }
   0x8   :  { %p215_p3 = por %p214_p2, %p213_p1 }
   0xa   :  { %p216_p4 = pnand %p215_p3, %p209_p0 }
   0xc   :  { %219 = shalt.err (!%p216_p4)
}
   0xd   :  { %23 = dma.hbm_to_vmem [thread:$0]  %s357_s0, 128, %s21_s16, [#allocation3]  }
   0xe   :  { %s228_s22 = scalar_lea.vmem %s30_s18, 256  ;;  %p233_p6 = scmp.lt.s32.totalorder %s30_s18, %s30_s18 }
   0xf   :  { %p229_p5 = scmp.ne.s32.totalorder %s30_s18, %s228_s22  ;;  %p234_p7 = scmp.lt.s32.totalorder %s228_s22, %s228_s22 }
  0x11   :  { %p235_p8 = por %p234_p7, %p233_p6 }
  0x13   :  { %p236_p9 = pnand %p235_p8, %p229_p5 }
  0x15   :  { %239 = shalt.err (!%p236_p9)
}
  0x16   :  { %s310_s23 = smov 64   ;;  %s311_s24 = smov 4  }
  0x17   :  { %35 = dma.hbm_to_vmem [thread:$0]  %s358_s1, 256, %s30_s18, [#allocation6], %s310_s23, %s310_s23, %s311_s24  }
  0x18   :  { %300 = dma.done.wait [#allocation3], 128  }
  0x19   :  { %301 = vsyncadd [#allocation3], 4294967168 }
  0x1a   :  { %302 = dma.done.wait [#allocation6], 256  }
  0x1b   :  { %303 = vsyncadd [#allocation6], 4294967040  ;;  %v312_v0 = vmov 0.0   ;;  %vm313_vm0 = vmmov 0   ;;  %v198_v1 = vld [vmem:[#allocation5 + $0x8] sm:$0xff]   ;;  %v199_v2 = vld [vmem:[#allocation5] sm:$0xff]  }
  0x1c   :  { %181 = vmatprep.subr.bf16.mxu0 %v312_v0  ;;  %47 = vst [vmem:[#allocation8] sm:$0x1] %v312_v0  ;;  %48 = vst [vmem:[#allocation10] sm:$0x1] %v312_v0  ;;  %185 = vmatprep.mubr.msk.bf16.mxu0 %vm313_vm0, %v312_v0  ;;  %v49_v3 = vld [vmem:[#allocation2] sm:$0xff]  ;;  %vm67_vm1 = vcmask 261120  }
  0x1d   :  { %182 = vmatpush3.bf16.msra.mxu0 %v198_v1  ;;  %v50_v4 = vpack.c.bf16 %v49_v3, %v49_v3  ;;  %s314_s0 = smov [#allocation7]  }
  0x1e   :  { %183 = vmatprep.subr.bf16.mxu0 %v312_v0  ;;  %s138_s1 = sshll.u32 %s314_s0, 4  ;;  %s139_s1 = int_to_ptr.vmem [resolvable:$true] %s138_s1 }
  0x1f   :  { %s240_s27 = scalar_lea.vmem %s139_s1, 64  ;;  %p245_p11 = scmp.lt.s32.totalorder %s139_s1, %s139_s1 }
  0x20   :  { %p241_p10 = scmp.ne.s32.totalorder %s139_s1, %s240_s27  ;;  %p246_p12 = scmp.lt.s32.totalorder %s240_s27, %s240_s27 }
  0x21   :  { %184 = vmatpush3.bf16.msra.mxu0 %v199_v2 }
  0x22   :  { %p247_p13 = por %p246_p12, %p245_p11 }
  0x24   :  { %186 = vmatmul.mubr.msk.bf16.vlgmr.msra.gmra.mxu0 %vm67_vm1, %v50_v4  ;;  %p248_p0 = pnand %p247_p13, %p241_p10 }
  0xe4   :  { %v105_v5 = vpop.f32.mrf.mxu0 }
  0xe5   :  { %v112_v6 = vrot.slane %v105_v5, 4  ;;  %v121_v7 = vmul.f32 %v105_v5, %v105_v5  ;;  %v130_v8 = vpack.c.bf16 %v105_v5, %v105_v5 }
  0xe6   :  { %v187_v9 = vpop.f32.mrf.mxu0 }
  0xe7   :  { %v113_v10 = vadd.f32 %v112_v6, %v105_v5  ;;  %v122_v11 = vrot.slane %v121_v7, 4  ;;  %131 = vst [vmem:[#allocation7] sm:$0xf] %v130_v8 }
  0xe8   :  { %v108_v12 = vpop.f32.mrf.mxu0 }
  0xe9   :  { %251 = shalt.err (!%p248_p0)
}
  0xea   :  { %141 = dma.vmem_to_hbm [thread:$0]  %s139_s1, 64, %s359_s2, [#allocation4]   ;;  %v114_v13 = vrot.slane %v113_v10, 2  ;;  %v123_v14 = vadd.f32 %v122_v11, %v121_v7  ;;  %v188_v15 = vpop.f32.mrf.mxu0  ;;  %v111_v20 = vld [vmem:[#allocation8] sm:$0x1] }
  0xeb   :  { %s315_s30 = smov [#allocation8]   ;;  %v120_v23 = vld [vmem:[#allocation10] sm:$0x1]  ;;  %s316_s6 = smov [#allocation10]  }
  0xec   :  { %v115_v16 = vadd.f32 %v114_v13, %v113_v10  ;;  %v124_v17 = vrot.slane %v123_v14, 2  ;;  %s148_s5 = sshll.u32 %s315_s30, 4  ;;  %s158_s7 = sshll.u32 %s316_s6, 4  ;;  %s149_s5 = int_to_ptr.vmem [resolvable:$true] %s148_s5  ;;  %s159_s7 = int_to_ptr.vmem [resolvable:$true] %s158_s7 }
  0xed   :  { %s260_s2 = scalar_lea.vmem %s149_s5, 16  ;;  %s264_s8 = scalar_lea.vmem %s149_s5, 32 }
  0xee   :  { %v116_v18 = vrot.slane %v115_v16, 1  ;;  %v125_v19 = vadd.f32 %v124_v17, %v123_v14  ;;  %p261_p1 = scmp.ne.s32.totalorder %s149_s5, %s260_s2  ;;  %p265_p2 = scmp.lt.s32.totalorder %s149_s5, %s149_s5 }
  0xef   :  { %p266_p3 = scmp.lt.s32.totalorder %s264_s8, %s260_s2 }
  0xf0   :  { %v126_v21 = vrot.slane %v125_v19, 1  ;;  %v117_v22 = vadd.f32 %v116_v18, %v115_v16 }
  0xf1   :  { %p267_p4 = por %p266_p3, %p265_p2 }
  0xf2   :  { %v118_v24 = vadd.f32 %v117_v22, %v111_v20  ;;  %v127_v25 = vadd.f32 %v126_v21, %v125_v19 }
  0xf3   :  { %p268_p5 = pnand %p267_p4, %p261_p1 }
  0xf4   :  { %119 = vst [vmem:[#allocation8] sm:$0x1] %v118_v24  ;;  %v128_v26 = vadd.f32 %v127_v25, %v120_v23 }
  0xf5   :  { %271 = shalt.err (!%p268_p5)
}
  0xf6   :  { %151 = dma.vmem_to_hbm [thread:$0]  %s149_s5, 16, %s360_s3, [#allocation9]   ;;  %129 = vst [vmem:[#allocation10] sm:$0x1] %v128_v26 }
  0xf7   :  { %s280_s11 = scalar_lea.vmem %s159_s7, 16  ;;  %s284_s12 = scalar_lea.vmem %s159_s7, 32 }
  0xf8   :  { %p281_p6 = scmp.ne.s32.totalorder %s159_s7, %s280_s11  ;;  %p285_p7 = scmp.lt.s32.totalorder %s159_s7, %s159_s7 }
  0xf9   :  { %p286_p8 = scmp.lt.s32.totalorder %s284_s12, %s280_s11 }
  0xfb   :  { %p287_p9 = por %p286_p8, %p285_p7 }
  0xfd   :  { %p288_p10 = pnand %p287_p9, %p281_p6 }
  0xff   :  { %291 = shalt.err (!%p288_p10)
}
 0x100   :  { %161 = dma.vmem_to_hbm [thread:$0]  %s159_s7, 16, %s361_s4, [#allocation9]  }
 0x101   :  { %304 = dma.done.wait [#allocation4], 64  }
 0x102   :  { %305 = vsyncadd [#allocation4], 4294967232 }
 0x103   :  { %306 = dma.done.wait [#allocation9], 32  }
 0x104   :  { %307 = vsyncadd [#allocation9], 4294967264 }
 0x105   :  { %171 = vsyncpa [#allocation3], 1 }
 0x106   :  { %172 = vsyncpa [#allocation6], 1 }
 0x107   :  { %173 = vsyncpa [#allocation4], 1 }
 0x108   :  { %174 = vsyncpa [#allocation9], 1 }

</bundles_post_ra>
